<compile_context>
chip_gen: v6e
topology: v6e:2x2x1
jax: 0.10.0
libtpu: 0.0.40
codegen_flags: <defaults>
</compile_context>

<pallas_src>
import functools

import jax
import jax.numpy as jnp
from jax.experimental import pallas as pl
from jax.experimental.pallas import tpu as pltpu


def _round_up(x, m):
    return ((x + m - 1) // m) * m


def _rep_composer_kernel(adj_ref, h0_ref, w1_ref, b1_ref, w2_ref, b2_ref,
                         out_ref, *, n_layers, gin_eps):
    """Single invocation runs all layers (L is small & static -> unrolled loop).

    adj_ref : [Np, Np]    bf16   dense adjacency, adj[dst, src] = edge count
    h0_ref  : [Np, Dp]    f32    initial node features (zero-padded)
    w1_ref  : [L, Dp, Dp] bf16   GIN-MLP first linear
    b1_ref  : [L, 1, Dp]  f32
    w2_ref  : [L, Dp, Dp] bf16   GIN-MLP second linear with eval-BN folded in
    b2_ref  : [L, 1, Dp]  f32    (bias with eval-BN folded in)
    out_ref : [L, Np, Dp] f32    per-layer outputs
    """
    adj = adj_ref[...]                 # bf16, loaded once, reused every layer
    x = h0_ref[...]                    # f32 carried node features

    for l in range(n_layers):          # static unroll
        # GIN 'add' aggregation on the MXU: bf16 operands, f32 accumulation.
        agg = jnp.dot(adj, x.astype(jnp.bfloat16),
                      preferred_element_type=jnp.float32)
        if gin_eps == 0.0:             # static branch (train_eps=False -> eps == 0)
            z = x + agg
        else:
            z = (1.0 + gin_eps) * x + agg

        # GIN MLP: Linear -> ReLU -> Linear (BN folded into the 2nd linear), f32 epilogue.
        h1 = jnp.dot(z.astype(jnp.bfloat16), w1_ref[l],
                     preferred_element_type=jnp.float32) + b1_ref[l]
        h1 = jnp.maximum(h1, 0.0)
        h2 = jnp.dot(h1.astype(jnp.bfloat16), w2_ref[l],
                     preferred_element_type=jnp.float32) + b2_ref[l]

        # eval-mode BatchNorm is already folded into w2/b2 -> only the ReLU remains.
        x = jnp.maximum(h2, 0.0)

        out_ref[l] = x.astype(out_ref.dtype)   # lane-dense (Dp = k*128) unmasked stores


def rep_composer_forward(h, edge_index, params, *, gin_eps=0.0, bn_eps=1e-5):
    """h: [N, D] float32 node features; edge_index: [2, E] int32 (row0=src, row1=dst)."""
    N, D = h.shape
    L = params["w1"].shape[0]

    # Lane/sublane-dense padding targets.
    Np = _round_up(max(N, 8), 8)
    Dp = _round_up(max(D, 128), 128)

    # ---- glue (plain JAX): dense adjacency + BN folding + padding + dtype casts ----
    src, dst = edge_index[0], edge_index[1]
    # adj[i, j] = number of edges j -> i ; small integer counts are exact in bf16.
    adj = jnp.zeros((Np, Np), jnp.float32).at[dst, src].add(1.0)
    adj_b = adj.astype(jnp.bfloat16)

    # Fold eval-mode BatchNorm1d into Linear2:  y = (h1 @ w2 + b2) * s + t
    #   => w2' = w2 * s (per output column), b2' = b2 * s + t
    scale = params["bn_gamma"] / jnp.sqrt(params["bn_var"] + bn_eps)     # [L, D]
    shift = params["bn_beta"] - params["bn_mean"] * scale                # [L, D]
    w2f = params["w2"] * scale[:, None, :]                               # [L, D, D]
    b2f = params["b2"] * scale + shift                                   # [L, D]

    def pad_last2(x, r, c):
        return jnp.pad(x, [(0, 0)] * (x.ndim - 2)
                       + [(0, r - x.shape[-2]), (0, c - x.shape[-1])])

    h0 = jnp.pad(h.astype(jnp.float32), ((0, Np - N), (0, Dp - D)))
    w1p = pad_last2(params["w1"].astype(jnp.float32), Dp, Dp).astype(jnp.bfloat16)
    w2p = pad_last2(w2f.astype(jnp.float32), Dp, Dp).astype(jnp.bfloat16)
    b1p = jnp.pad(params["b1"].astype(jnp.float32),
                  ((0, 0), (0, Dp - D))).reshape(L, 1, Dp)
    b2p = jnp.pad(b2f.astype(jnp.float32),
                  ((0, 0), (0, Dp - D))).reshape(L, 1, Dp)

    # ---- VMEM budget (single invocation, no double-buffering) ----
    bytes_needed = (Np * Np * 2            # adj (bf16)
                    + Np * Dp * 4          # h0 (f32)
                    + 2 * L * Dp * Dp * 2  # w1, w2 (bf16)
                    + 2 * L * Dp * 4       # b1, b2 (f32)
                    + L * Np * Dp * 4      # output slab (f32)
                    + 8 * Np * Dp * 4)     # loose bound on live f32 temporaries
    if bytes_needed > (40 << 20):
        # TODO(synk): row-tiled / block-sparse aggregation path for graphs this large.
        raise ValueError(
            f"dense-adjacency RepComposer kernel needs ~{bytes_needed / 2**20:.1f} MiB "
            "of VMEM; use a row-tiled / block-sparse variant for this size.")
    vmem_limit = int(min(max(2 * bytes_needed, 16 << 20), 40 << 20))

    kernel = functools.partial(_rep_composer_kernel,
                               n_layers=L, gin_eps=float(gin_eps))

    hs = pl.pallas_call(
        kernel,
        out_shape=jax.ShapeDtypeStruct((L, Np, Dp), jnp.float32),
        # No grid: one invocation, whole arrays resident in VMEM exactly once.
        in_specs=[pl.BlockSpec(memory_space=pltpu.MemorySpace.VMEM)] * 6,
        out_specs=pl.BlockSpec(memory_space=pltpu.MemorySpace.VMEM),
        compiler_params=pltpu.CompilerParams(vmem_limit_bytes=vmem_limit),
    )(adj_b, h0, w1p, b1p, w2p, b2p)

    # Strip padding; one [N, D] tensor per layer (== torch hs[1:]).
    return [hs[l, :N, :D] for l in range(L)]


# ----------------------------- references -----------------------------------------

def _reference_matched(h, edge_index, params, *, gin_eps=0.0, bn_eps=1e-5):
    """Pure-JAX reference using the SAME numerics as the kernel
    (bf16 matmul operands, f32 accumulation, BN folded into Linear2)."""
    N, D = h.shape
    L = params["w1"].shape[0]
    src, dst = edge_index[0], edge_index[1]
    adj = jnp.zeros((N, N), jnp.float32).at[dst, src].add(1.0).astype(jnp.bfloat16)
    scale = params["bn_gamma"] / jnp.sqrt(params["bn_var"] + bn_eps)
    shift = params["bn_beta"] - params["bn_mean"] * scale
    w1 = params["w1"].astype(jnp.bfloat16)
    w2 = (params["w2"] * scale[:, None, :]).astype(jnp.bfloat16)
    b2 = params["b2"] * scale + shift

    outs = []
    x = h.astype(jnp.float32)
    for l in range(L):
        agg = jnp.dot(adj, x.astype(jnp.bfloat16), preferred_element_type=jnp.float32)
        z = x + agg if gin_eps == 0.0 else (1.0 + gin_eps) * x + agg
        h1 = jnp.maximum(
            jnp.dot(z.astype(jnp.bfloat16), w1[l], preferred_element_type=jnp.float32)
            + params["b1"][l], 0.0)
        h2 = jnp.dot(h1.astype(jnp.bfloat16), w2[l],
                     preferred_element_type=jnp.float32) + b2[l]
        x = jnp.maximum(h2, 0.0)
        outs.append(x)
    return outs


def _reference_f32(h, edge_index, params, *, gin_eps=0.0, bn_eps=1e-5):
    """Full-f32 reference of the original module semantics (loose sanity check)."""
    N, D = h.shape
    L = params["w1"].shape[0]
    src, dst = edge_index[0], edge_index[1]
    adj = jnp.zeros((N, N), jnp.float32).at[dst, src].add(1.0)
    outs = []
    x = h.astype(jnp.float32)
    for l in range(L):
        agg = adj @ x
        z = (1.0 + gin_eps) * x + agg
        h1 = jnp.maximum(z @ params["w1"][l] + params["b1"][l], 0.0)
        h2 = h1 @ params["w2"][l] + params["b2"][l]
        scale = params["bn_gamma"][l] / jnp.sqrt(params["bn_var"][l] + bn_eps)
        shift = params["bn_beta"][l] - params["bn_mean"][l] * scale
        x = jnp.maximum(h2 * scale + shift, 0.0)
        outs.append(x)
    return outs


def make_params(key, L, D):
    """Deterministic synthetic init (matches shapes implied by __init__)."""
    ks = jax.random.split(key, 8)
    return {
        "w1": 0.2 * jax.random.normal(ks[0], (L, D, D), jnp.float32),
        "b1": 0.1 * jax.random.normal(ks[1], (L, D), jnp.float32),
        "w2": 0.2 * jax.random.normal(ks[2], (L, D, D), jnp.float32),
        "b2": 0.1 * jax.random.normal(ks[3], (L, D), jnp.float32),
        "bn_gamma": 1.0 + 0.1 * jax.random.normal(ks[4], (L, D), jnp.float32),
        "bn_beta": 0.1 * jax.random.normal(ks[5], (L, D), jnp.float32),
        "bn_mean": 0.05 * jax.random.normal(ks[6], (L, D), jnp.float32),
        "bn_var": 1.0 + 0.1 * jax.nn.softplus(
            jax.random.normal(ks[7], (L, D), jnp.float32)),
    }


if __name__ == "__main__":
    key = jax.random.PRNGKey(0)
    k_h, k_e, k_p = jax.random.split(key, 3)

    N_NODES, EMB_DIM, N_LAYERS, N_EDGES = 16, 32, 3, 48

    h = jax.random.normal(k_h, (N_NODES, EMB_DIM), jnp.float32)
    # synthetic directed edges: a ring plus random edges, shape [2, E] (row0=src, row1=dst)
    ring_src = jnp.arange(N_NODES, dtype=jnp.int32)
    ring_dst = (ring_src + 1) % N_NODES
    rand = jax.random.randint(k_e, (2, N_EDGES - N_NODES), 0, N_NODES, dtype=jnp.int32)
    edge_index = jnp.concatenate([jnp.stack([ring_src, ring_dst]), rand], axis=1)

    params = make_params(k_p, N_LAYERS, EMB_DIM)

    outs = rep_composer_forward(h, edge_index, params)
    outs = [jax.block_until_ready(o) for o in outs]

    refs_m = _reference_matched(h, edge_index, params)   # same bf16-matmul numerics
    refs_f = _reference_f32(h, edge_index, params)       # original f32 semantics
    for o, rm, rf in zip(outs, refs_m, refs_f):
        assert o.shape == (N_NODES, EMB_DIM)
        assert jnp.max(jnp.abs(o - rm)) < 1e-2
        assert jnp.max(jnp.abs(o - rf)) < 0.15 * (1.0 + jnp.max(jnp.abs(rf)))

    print("KERNEL_OK")
</pallas_src>

<mosaic_0001>
module attributes {stable_mosaic.version = 11 : i64} {
  func.func @_rep_composer_kernel(%arg0: memref<16x16xbf16, #tpu.memory_space<vmem>>, %arg1: memref<16x128xf32, #tpu.memory_space<vmem>>, %arg2: memref<3x128x128xbf16, #tpu.memory_space<vmem>>, %arg3: memref<3x1x128xf32, #tpu.memory_space<vmem>>, %arg4: memref<3x128x128xbf16, #tpu.memory_space<vmem>>, %arg5: memref<3x1x128xf32, #tpu.memory_space<vmem>>, %arg6: memref<3x16x128xf32, #tpu.memory_space<vmem>>) attributes {dimension_semantics = [], scalar_prefetch = 0 : i64, scratch_operands = 0 : i64, tpu.core_type = #tpu.core_type<tc>} {
    %c0 = arith.constant 0 : index
    %c0_0 = arith.constant 0 : index
    %0 = vector.load %arg0[%c0, %c0_0] : memref<16x16xbf16, #tpu.memory_space<vmem>>, vector<16x16xbf16>
    %c0_1 = arith.constant 0 : index
    %c0_2 = arith.constant 0 : index
    %1 = vector.load %arg1[%c0_1, %c0_2] : memref<16x128xf32, #tpu.memory_space<vmem>>, vector<16x128xf32>
    %2 = arith.truncf %1 : vector<16x128xf32> to vector<16x128xbf16>
    %cst = arith.constant dense<0.000000e+00> : vector<16x128xf32>
    %3 = tpu.matmul %0, %2, %cst {dimension_numbers = #tpu.dot_dimension_numbers<[1], [0], [0], [1], [0, 0, 1, 1], [], []>} : vector<16x16xbf16>, vector<16x128xbf16>, vector<16x128xf32> -> vector<16x128xf32>
    %4 = arith.addf %1, %3 : vector<16x128xf32>
    %5 = arith.truncf %4 : vector<16x128xf32> to vector<16x128xbf16>
    %c0_3 = arith.constant 0 : index
    %c0_4 = arith.constant 0 : index
    %c0_5 = arith.constant 0 : index
    %6 = vector.load %arg2[%c0_3, %c0_4, %c0_5] : memref<3x128x128xbf16, #tpu.memory_space<vmem>>, vector<1x128x128xbf16>
    %7 = vector.shape_cast %6 : vector<1x128x128xbf16> to vector<128x128xbf16>
    %cst_6 = arith.constant dense<0.000000e+00> : vector<16x128xf32>
    %8 = tpu.matmul %5, %7, %cst_6 {dimension_numbers = #tpu.dot_dimension_numbers<[1], [0], [0], [1], [0, 0, 1, 1], [], []>} : vector<16x128xbf16>, vector<128x128xbf16>, vector<16x128xf32> -> vector<16x128xf32>
    %c0_7 = arith.constant 0 : index
    %c0_8 = arith.constant 0 : index
    %c0_9 = arith.constant 0 : index
    %9 = vector.load %arg3[%c0_7, %c0_8, %c0_9] : memref<3x1x128xf32, #tpu.memory_space<vmem>>, vector<1x1x128xf32>
    %10 = vector.shape_cast %9 : vector<1x1x128xf32> to vector<1x128xf32>
    %11 = vector.broadcast %10 : vector<1x128xf32> to vector<16x128xf32>
    %12 = arith.addf %8, %11 : vector<16x128xf32>
    %cst_10 = arith.constant 0.000000e+00 : f32
    %13 = vector.broadcast %cst_10 : f32 to vector<16x128xf32>
    %14 = arith.maximumf %12, %13 : vector<16x128xf32>
    %15 = arith.truncf %14 : vector<16x128xf32> to vector<16x128xbf16>
    %c0_11 = arith.constant 0 : index
    %c0_12 = arith.constant 0 : index
    %c0_13 = arith.constant 0 : index
    %16 = vector.load %arg4[%c0_11, %c0_12, %c0_13] : memref<3x128x128xbf16, #tpu.memory_space<vmem>>, vector<1x128x128xbf16>
    %17 = vector.shape_cast %16 : vector<1x128x128xbf16> to vector<128x128xbf16>
    %cst_14 = arith.constant dense<0.000000e+00> : vector<16x128xf32>
    %18 = tpu.matmul %15, %17, %cst_14 {dimension_numbers = #tpu.dot_dimension_numbers<[1], [0], [0], [1], [0, 0, 1, 1], [], []>} : vector<16x128xbf16>, vector<128x128xbf16>, vector<16x128xf32> -> vector<16x128xf32>
    %c0_15 = arith.constant 0 : index
    %c0_16 = arith.constant 0 : index
    %c0_17 = arith.constant 0 : index
    %19 = vector.load %arg5[%c0_15, %c0_16, %c0_17] : memref<3x1x128xf32, #tpu.memory_space<vmem>>, vector<1x1x128xf32>
    %20 = vector.shape_cast %19 : vector<1x1x128xf32> to vector<1x128xf32>
    %21 = vector.broadcast %20 : vector<1x128xf32> to vector<16x128xf32>
    %22 = arith.addf %18, %21 : vector<16x128xf32>
    %cst_18 = arith.constant 0.000000e+00 : f32
    %23 = vector.broadcast %cst_18 : f32 to vector<16x128xf32>
    %24 = arith.maximumf %22, %23 : vector<16x128xf32>
    %c0_19 = arith.constant 0 : index
    %c0_20 = arith.constant 0 : index
    %c0_21 = arith.constant 0 : index
    %25 = vector.load %arg6[%c0_19, %c0_20, %c0_21] : memref<3x16x128xf32, #tpu.memory_space<vmem>>, vector<1x16x128xf32>
    %26 = vector.shape_cast %25 : vector<1x16x128xf32> to vector<16x128xf32>
    %27 = vector.shape_cast %24 : vector<16x128xf32> to vector<1x16x128xf32>
    tpu.vector_store %arg6[%c0_19, %c0_20, %c0_21], %27 {strides = array<i32>} : memref<3x16x128xf32, #tpu.memory_space<vmem>>, vector<1x16x128xf32>,
    %28 = arith.truncf %24 : vector<16x128xf32> to vector<16x128xbf16>
    %cst_22 = arith.constant dense<0.000000e+00> : vector<16x128xf32>
    %29 = tpu.matmul %0, %28, %cst_22 {dimension_numbers = #tpu.dot_dimension_numbers<[1], [0], [0], [1], [0, 0, 1, 1], [], []>} : vector<16x16xbf16>, vector<16x128xbf16>, vector<16x128xf32> -> vector<16x128xf32>
    %30 = arith.addf %24, %29 : vector<16x128xf32>
    %31 = arith.truncf %30 : vector<16x128xf32> to vector<16x128xbf16>
    %c1 = arith.constant 1 : index
    %c0_23 = arith.constant 0 : index
    %c0_24 = arith.constant 0 : index
    %32 = vector.load %arg2[%c1, %c0_23, %c0_24] : memref<3x128x128xbf16, #tpu.memory_space<vmem>>, vector<1x128x128xbf16>
    %33 = vector.shape_cast %32 : vector<1x128x128xbf16> to vector<128x128xbf16>
    %cst_25 = arith.constant dense<0.000000e+00> : vector<16x128xf32>
    %34 = tpu.matmul %31, %33, %cst_25 {dimension_numbers = #tpu.dot_dimension_numbers<[1], [0], [0], [1], [0, 0, 1, 1], [], []>} : vector<16x128xbf16>, vector<128x128xbf16>, vector<16x128xf32> -> vector<16x128xf32>
    %c1_26 = arith.constant 1 : index
    %c0_27 = arith.constant 0 : index
    %c0_28 = arith.constant 0 : index
    %35 = vector.load %arg3[%c1_26, %c0_27, %c0_28] : memref<3x1x128xf32, #tpu.memory_space<vmem>>, vector<1x1x128xf32>
    %36 = vector.shape_cast %35 : vector<1x1x128xf32> to vector<1x128xf32>
    %37 = vector.broadcast %36 : vector<1x128xf32> to vector<16x128xf32>
    %38 = arith.addf %34, %37 : vector<16x128xf32>
    %cst_29 = arith.constant 0.000000e+00 : f32
    %39 = vector.broadcast %cst_29 : f32 to vector<16x128xf32>
    %40 = arith.maximumf %38, %39 : vector<16x128xf32>
    %41 = arith.truncf %40 : vector<16x128xf32> to vector<16x128xbf16>
    %c1_30 = arith.constant 1 : index
    %c0_31 = arith.constant 0 : index
    %c0_32 = arith.constant 0 : index
    %42 = vector.load %arg4[%c1_30, %c0_31, %c0_32] : memref<3x128x128xbf16, #tpu.memory_space<vmem>>, vector<1x128x128xbf16>
    %43 = vector.shape_cast %42 : vector<1x128x128xbf16> to vector<128x128xbf16>
    %cst_33 = arith.constant dense<0.000000e+00> : vector<16x128xf32>
    %44 = tpu.matmul %41, %43, %cst_33 {dimension_numbers = #tpu.dot_dimension_numbers<[1], [0], [0], [1], [0, 0, 1, 1], [], []>} : vector<16x128xbf16>, vector<128x128xbf16>, vector<16x128xf32> -> vector<16x128xf32>
    %c1_34 = arith.constant 1 : index
    %c0_35 = arith.constant 0 : index
    %c0_36 = arith.constant 0 : index
    %45 = vector.load %arg5[%c1_34, %c0_35, %c0_36] : memref<3x1x128xf32, #tpu.memory_space<vmem>>, vector<1x1x128xf32>
    %46 = vector.shape_cast %45 : vector<1x1x128xf32> to vector<1x128xf32>
    %47 = vector.broadcast %46 : vector<1x128xf32> to vector<16x128xf32>
    %48 = arith.addf %44, %47 : vector<16x128xf32>
    %cst_37 = arith.constant 0.000000e+00 : f32
    %49 = vector.broadcast %cst_37 : f32 to vector<16x128xf32>
    %50 = arith.maximumf %48, %49 : vector<16x128xf32>
    %c1_38 = arith.constant 1 : index
    %c0_39 = arith.constant 0 : index
    %c0_40 = arith.constant 0 : index
    %51 = vector.load %arg6[%c1_38, %c0_39, %c0_40] : memref<3x16x128xf32, #tpu.memory_space<vmem>>, vector<1x16x128xf32>
    %52 = vector.shape_cast %51 : vector<1x16x128xf32> to vector<16x128xf32>
    %53 = vector.shape_cast %50 : vector<16x128xf32> to vector<1x16x128xf32>
    tpu.vector_store %arg6[%c1_38, %c0_39, %c0_40], %53 {strides = array<i32>} : memref<3x16x128xf32, #tpu.memory_space<vmem>>, vector<1x16x128xf32>,
    %54 = arith.truncf %50 : vector<16x128xf32> to vector<16x128xbf16>
    %cst_41 = arith.constant dense<0.000000e+00> : vector<16x128xf32>
    %55 = tpu.matmul %0, %54, %cst_41 {dimension_numbers = #tpu.dot_dimension_numbers<[1], [0], [0], [1], [0, 0, 1, 1], [], []>} : vector<16x16xbf16>, vector<16x128xbf16>, vector<16x128xf32> -> vector<16x128xf32>
    %56 = arith.addf %50, %55 : vector<16x128xf32>
    %57 = arith.truncf %56 : vector<16x128xf32> to vector<16x128xbf16>
    %c2 = arith.constant 2 : index
    %c0_42 = arith.constant 0 : index
    %c0_43 = arith.constant 0 : index
    %58 = vector.load %arg2[%c2, %c0_42, %c0_43] : memref<3x128x128xbf16, #tpu.memory_space<vmem>>, vector<1x128x128xbf16>
    %59 = vector.shape_cast %58 : vector<1x128x128xbf16> to vector<128x128xbf16>
    %cst_44 = arith.constant dense<0.000000e+00> : vector<16x128xf32>
    %60 = tpu.matmul %57, %59, %cst_44 {dimension_numbers = #tpu.dot_dimension_numbers<[1], [0], [0], [1], [0, 0, 1, 1], [], []>} : vector<16x128xbf16>, vector<128x128xbf16>, vector<16x128xf32> -> vector<16x128xf32>
    %c2_45 = arith.constant 2 : index
    %c0_46 = arith.constant 0 : index
    %c0_47 = arith.constant 0 : index
    %61 = vector.load %arg3[%c2_45, %c0_46, %c0_47] : memref<3x1x128xf32, #tpu.memory_space<vmem>>, vector<1x1x128xf32>
    %62 = vector.shape_cast %61 : vector<1x1x128xf32> to vector<1x128xf32>
    %63 = vector.broadcast %62 : vector<1x128xf32> to vector<16x128xf32>
    %64 = arith.addf %60, %63 : vector<16x128xf32>
    %cst_48 = arith.constant 0.000000e+00 : f32
    %65 = vector.broadcast %cst_48 : f32 to vector<16x128xf32>
    %66 = arith.maximumf %64, %65 : vector<16x128xf32>
    %67 = arith.truncf %66 : vector<16x128xf32> to vector<16x128xbf16>
    %c2_49 = arith.constant 2 : index
    %c0_50 = arith.constant 0 : index
    %c0_51 = arith.constant 0 : index
    %68 = vector.load %arg4[%c2_49, %c0_50, %c0_51] : memref<3x128x128xbf16, #tpu.memory_space<vmem>>, vector<1x128x128xbf16>
    %69 = vector.shape_cast %68 : vector<1x128x128xbf16> to vector<128x128xbf16>
    %cst_52 = arith.constant dense<0.000000e+00> : vector<16x128xf32>
    %70 = tpu.matmul %67, %69, %cst_52 {dimension_numbers = #tpu.dot_dimension_numbers<[1], [0], [0], [1], [0, 0, 1, 1], [], []>} : vector<16x128xbf16>, vector<128x128xbf16>, vector<16x128xf32> -> vector<16x128xf32>
    %c2_53 = arith.constant 2 : index
    %c0_54 = arith.constant 0 : index
    %c0_55 = arith.constant 0 : index
    %71 = vector.load %arg5[%c2_53, %c0_54, %c0_55] : memref<3x1x128xf32, #tpu.memory_space<vmem>>, vector<1x1x128xf32>
    %72 = vector.shape_cast %71 : vector<1x1x128xf32> to vector<1x128xf32>
    %73 = vector.broadcast %72 : vector<1x128xf32> to vector<16x128xf32>
    %74 = arith.addf %70, %73 : vector<16x128xf32>
    %cst_56 = arith.constant 0.000000e+00 : f32
    %75 = vector.broadcast %cst_56 : f32 to vector<16x128xf32>
    %76 = arith.maximumf %74, %75 : vector<16x128xf32>
    %c2_57 = arith.constant 2 : index
    %c0_58 = arith.constant 0 : index
    %c0_59 = arith.constant 0 : index
    %77 = vector.load %arg6[%c2_57, %c0_58, %c0_59] : memref<3x16x128xf32, #tpu.memory_space<vmem>>, vector<1x16x128xf32>
    %78 = vector.shape_cast %77 : vector<1x16x128xf32> to vector<16x128xf32>
    %79 = vector.shape_cast %76 : vector<16x128xf32> to vector<1x16x128xf32>
    tpu.vector_store %arg6[%c2_57, %c0_58, %c0_59], %79 {strides = array<i32>} : memref<3x16x128xf32, #tpu.memory_space<vmem>>, vector<1x16x128xf32>,
    return
  }
}

</mosaic_0001>

<bundles_post_ra>
// kernel: tpu_custom_call.1
= control target key start
LH: loop header
LB: loop body
LE: loop exit
PB: predicated region body
PF: predicated region fallthrough
CT: control target
= control target key end

     0   :  { %11 = vsyncpa [#allocation3], 0  ;;  %s1540_s0 = inlined_call_operand.hbm [shape: bf16[16,16], index: 0, kind: input, shape index: {}]   ;;  %s1541_s1 = inlined_call_operand.hbm [shape: f32[16,128], index: 1, kind: input, shape index: {}]   ;;  %s1542_s2 = inlined_call_operand.hbm [shape: bf16[3,128,128], index: 2, kind: input, shape index: {}]   ;;  %s1543_s3 = inlined_call_operand.vmem [shape: f32[3,1,128], index: 3, kind: input, shape index: {}]   ;;  %s1544_s4 = inlined_call_operand.hbm [shape: bf16[3,128,128], index: 4, kind: input, shape index: {}]   ;;  %s1545_s5 = inlined_call_operand.vmem [shape: f32[3,1,128], index: 5, kind: input, shape index: {}]   ;;  %s1546_s6 = inlined_call_operand.hbm [shape: f32[3,16,128], index: 6, kind: output, shape index: {}]  }
   0x1   :  { %12 = vsyncpa [#allocation6], 0 }
   0x2   :  { %13 = vsyncpa [#allocation9], 0 }
   0x3   :  { %14 = vsyncpa [#allocation4], 0  ;;  %s1378_s21 = smov [#allocation5]  }
   0x4   :  { %s32_s22 = sshll.u32 %s1378_s21, 4  ;;  %s33_s22 = int_to_ptr.vmem [resolvable:$true] %s32_s22 }
   0x5   :  { %s1278_s23 = scalar_lea.vmem %s33_s22, 256  ;;  %p1283_p1 = scmp.lt.s32.totalorder %s33_s22, %s33_s22 }
   0x6   :  { %p1279_p0 = scmp.ne.s32.totalorder %s33_s22, %s1278_s23  ;;  %p1284_p2 = scmp.lt.s32.totalorder %s1278_s23, %s1278_s23 }
   0x8   :  { %p1285_p3 = por %p1284_p2, %p1283_p1 }
   0xa   :  { %p1286_p4 = pnand %p1285_p3, %p1279_p0 }
   0xc   :  { %1289 = shalt.err (!%p1286_p4)
}
   0xd   :  { %s1379_s24 = smov 128   ;;  %s1380_s25 = smov 8  }
   0xe   :  { %38 = dma.hbm_to_vmem [thread:$0]  %s1541_s1, 256, %s33_s22, [#allocation6], %s1379_s24, %s1379_s24, %s1380_s25  }
   0xf   :  { %s1381_s28 = smov [#allocation2]  }
  0x10   :  { %s20_s29 = sshll.u32 %s1381_s28, 4  ;;  %s21_s29 = int_to_ptr.vmem [resolvable:$true] %s20_s29 }
  0x11   :  { %s1298_s30 = scalar_lea.vmem %s21_s29, 128  ;;  %p1303_p6 = scmp.lt.s32.totalorder %s21_s29, %s21_s29 }
  0x12   :  { %p1299_p5 = scmp.ne.s32.totalorder %s21_s29, %s1298_s30  ;;  %p1304_p7 = scmp.lt.s32.totalorder %s1298_s30, %s1298_s30 }
  0x14   :  { %p1305_p8 = por %p1304_p7, %p1303_p6 }
  0x16   :  { %p1306_p9 = pnand %p1305_p8, %p1299_p5 }
  0x18   :  { %1309 = shalt.err (!%p1306_p9)
}
  0x19   :  { %s1382_s7 = smov 64   ;;  %s1383_s8 = smov 4  }
  0x1a   :  { %26 = dma.hbm_to_vmem [thread:$0]  %s1540_s0, 128, %s21_s29, [#allocation3], %s1382_s7, %s1382_s7, %s1383_s8  }
  0x1b   :  { %s1384_s11 = smov [#allocation7]   ;;  %s1385_s13 = smov [#allocation8]  }
  0x1c   :  { %s44_s12 = sshll.u32 %s1384_s11, 4  ;;  %s58_s1 = sshll.u32 %s1385_s13, 4  ;;  %s45_s12 = int_to_ptr.vmem [resolvable:$true] %s44_s12  ;;  %s59_s1 = int_to_ptr.vmem [resolvable:$true] %s58_s1 }
  0x1d   :  { %s1318_s14 = scalar_lea.vmem %s45_s12, 3072  ;;  %p1323_p11 = scmp.lt.s32.totalorder %s45_s12, %s45_s12 }
  0x1e   :  { %p1319_p10 = scmp.ne.s32.totalorder %s45_s12, %s1318_s14  ;;  %p1324_p12 = scmp.lt.s32.totalorder %s1318_s14, %s1318_s14 }
  0x20   :  { %p1325_p13 = por %p1324_p12, %p1323_p11 }
  0x22   :  { %p1326_p0 = pnand %p1325_p13, %p1319_p10 }
  0x24   :  { %1329 = shalt.err (!%p1326_p0)
}
  0x25   :  { %50 = dma.hbm_to_vmem [thread:$0]  %s1542_s2, 3072, %s45_s12, [#allocation6], %s1382_s7, %s1382_s7, %s1383_s8  }
  0x26   :  { %s1338_s17 = scalar_lea.vmem %s59_s1, 3072  ;;  %p1343_p2 = scmp.lt.s32.totalorder %s59_s1, %s59_s1 }
  0x27   :  { %p1339_p1 = scmp.ne.s32.totalorder %s59_s1, %s1338_s17  ;;  %p1344_p3 = scmp.lt.s32.totalorder %s1338_s17, %s1338_s17 }
  0x29   :  { %p1345_p4 = por %p1344_p3, %p1343_p2 }
  0x2b   :  { %p1346_p5 = pnand %p1345_p4, %p1339_p1 }
  0x2d   :  { %1349 = shalt.err (!%p1346_p5)
}
  0x2e   :  { %64 = dma.hbm_to_vmem [thread:$0]  %s1544_s4, 3072, %s59_s1, [#allocation9], %s1382_s7, %s1382_s7, %s1383_s8  }
  0x2f   :  { %1370 = dma.done.wait [#allocation3], 128  }
  0x30   :  { %1371 = vsyncadd [#allocation3], 4294967168 }
  0x31   :  { %1372 = dma.done.wait [#allocation6], 3328  }
  0x32   :  { %1373 = vsyncadd [#allocation6], 4294963968 }
  0x33   :  { %1374 = dma.done.wait [#allocation9], 3072  }
  0x34   :  { %1375 = vsyncadd [#allocation9], 4294964224  ;;  %v1386_v0 = vmov 0.0   ;;  %vm1387_vm0 = vmmov 0   ;;  %v82_v1 = vld [vmem:[#allocation5] sm:$0xff]  ;;  %v83_v2 = vld [vmem:[#allocation5 + $0x8] sm:$0xff] }
  0x35   :  { %1072 = vmatprep.subr.bf16.mxu0 %v1386_v0  ;;  %1074 = vmatprep.mubr.msk.bf16.mxu0 %vm1387_vm0, %v1386_v0  ;;  %v84_v3 = vpack.c.bf16 %v83_v2, %v82_v1  ;;  %v1445_v4 = vld [vmem:[#allocation2] sm:$0xff]   ;;  %v1222_v5 = vld [vmem:[#allocation7 + $0x38] sm:$0xff]   ;;  %vm90_vm1 = vcmask 130048   ;;  %v1223_v6 = vld [vmem:[#allocation7 + $0x30] sm:$0xff]  }
  0x36   :  { %1078 = vmatprep.subr.bf16.mxu1 %v1386_v0  ;;  %1094 = vmatprep.mubr.msk.bf16.mxu1 %vm1387_vm0, %v1386_v0  ;;  %v1224_v7 = vld [vmem:[#allocation7 + $0x28] sm:$0xff]   ;;  %v1225_v8 = vld [vmem:[#allocation7 + $0x20] sm:$0xff]   ;;  %v1226_v9 = vld [vmem:[#allocation7 + $0x18] sm:$0xff]  }
  0x37   :  { %1073 = vmatpush3.bf16.msra.mxu0 %v84_v3  ;;  %1079 = vmatpush3.bf16.msra.mxu1 %v1222_v5  ;;  %v1227_v10 = vld [vmem:[#allocation7 + $0x10] sm:$0xff]   ;;  %v1228_v11 = vld [vmem:[#allocation7 + $0x8] sm:$0xff]   ;;  %v1229_v12 = vld [vmem:[#allocation7] sm:$0xff]  }
  0x38   :  { %1098 = vmatprep.subr.bf16.mxu0 %v1386_v0  ;;  %1080 = vmatprep.subr.bf16.mxu1 %v1386_v0  ;;  %v1230_v13 = vld [vmem:[#allocation8 + $0x38] sm:$0xff]   ;;  %v1231_v14 = vld [vmem:[#allocation8 + $0x30] sm:$0xff]   ;;  %v1232_v15 = vld [vmem:[#allocation8 + $0x28] sm:$0xff]  }
  0x39   :  { %v1233_v16 = vld [vmem:[#allocation8 + $0x20] sm:$0xff]   ;;  %v1234_v17 = vld [vmem:[#allocation8 + $0x18] sm:$0xff]   ;;  %v1235_v25 = vld [vmem:[#allocation8 + $0x10] sm:$0xff]  }
  0x3a   :  { %1075 = vmatmul.mubr.msk.bf16.vlgmr.msra.gmra.mxu0 %vm90_vm1, %v1445_v4  ;;  %v1236_v26 = vld [vmem:[#allocation8 + $0x8] sm:$0xff]   ;;  %v1237_v27 = vld [vmem:[#allocation8] sm:$0xff]   ;;  %v1238_v38 = vld [vmem:[#allocation7 + $0x78] sm:$0xff]  }
  0x3b   :  { %1114 = vmatprep.mubr.msk.bf16.mxu0 %vm1387_vm0, %v1386_v0  ;;  %1081 = vmatpush3.bf16.msra.mxu1 %v1223_v6  ;;  %v952_v28 = vld [vmem:[%s1543_s3] ss:$0 sm:$0xff]  ;;  %v1239_v39 = vld [vmem:[#allocation7 + $0x70] sm:$0xff]   ;;  %v1241_v41 = vld [vmem:[#allocation7 + $0x60] sm:$0xff]  }
  0x3c   :  { %1082 = vmatprep.subr.bf16.mxu1 %v1386_v0  ;;  %1099 = vmatpush3.bf16.msra.mxu0 %v1230_v13  ;;  %v1240_v40 = vld [vmem:[#allocation7 + $0x68] sm:$0xff]   ;;  %v1242_v42 = vld [vmem:[#allocation7 + $0x58] sm:$0xff]   ;;  %v1243_v43 = vld [vmem:[#allocation7 + $0x50] sm:$0xff]  }
  0x3d   :  { %1100 = vmatprep.subr.bf16.mxu0 %v1386_v0  ;;  %v961_v44 = vld [vmem:[%s1545_s5] ss:$0 sm:$0xff]  ;;  %v1245_v55 = vld [vmem:[#allocation7 + $0x40] sm:$0xff]   ;;  %v1246_v56 = vld [vmem:[#allocation8 + $0x78] sm:$0xff]  }
  0x3e   :  { %v1244_v54 = vld [vmem:[#allocation7 + $0x48] sm:$0xff]   ;;  %v1247_v57 = vld [vmem:[#allocation8 + $0x70] sm:$0xff]   ;;  %v1249_v59 = vld [vmem:[#allocation8 + $0x60] sm:$0xff]  }
  0x3f   :  { %1083 = vmatpush3.bf16.msra.mxu1 %v1224_v7  ;;  %v1248_v58 = vld [vmem:[#allocation8 + $0x68] sm:$0xff]   ;;  %v1250_v60 = vld [vmem:[#allocation8 + $0x58] sm:$0xff]   ;;  %v1251_v6 = vld [vmem:[#allocation8 + $0x50] sm:$0xff]  }
  0x40   :  { %1084 = vmatprep.subr.bf16.mxu1 %v1386_v0  ;;  %1101 = vmatpush3.bf16.msra.mxu0 %v1231_v14  ;;  %v1252_v7 = vld [vmem:[#allocation8 + $0x48] sm:$0xff]  }
  0x41   :  { %1102 = vmatprep.subr.bf16.mxu0 %v1386_v0 }
  0x43   :  { %1085 = vmatpush3.bf16.msra.mxu1 %v1225_v8  ;;  %v1253_v8 = vld [vmem:[#allocation8 + $0x40] sm:$0xff]  }
  0x44   :  { %1086 = vmatprep.subr.bf16.mxu1 %v1386_v0  ;;  %1103 = vmatpush3.bf16.msra.mxu0 %v1232_v15 }
  0x45   :  { %1104 = vmatprep.subr.bf16.mxu0 %v1386_v0 }
  0x47   :  { %1087 = vmatpush3.bf16.msra.mxu1 %v1226_v9  ;;  %v972_v9 = vld [vmem:[%s1543_s3 + $0x1] ss:$0 sm:$0xff] }
  0x48   :  { %1088 = vmatprep.subr.bf16.mxu1 %v1386_v0  ;;  %1105 = vmatpush3.bf16.msra.mxu0 %v1233_v16 }
  0x49   :  { %1106 = vmatprep.subr.bf16.mxu0 %v1386_v0 }
  0x4b   :  { %1089 = vmatpush3.bf16.msra.mxu1 %v1227_v10 }
  0x4c   :  { %1090 = vmatprep.subr.bf16.mxu1 %v1386_v0  ;;  %1107 = vmatpush3.bf16.msra.mxu0 %v1234_v17 }
  0x4d   :  { %1108 = vmatprep.subr.bf16.mxu0 %v1386_v0 }
  0x4f   :  { %1091 = vmatpush3.bf16.msra.mxu1 %v1228_v11 }
  0x50   :  { %1092 = vmatprep.subr.bf16.mxu1 %v1386_v0  ;;  %1109 = vmatpush3.bf16.msra.mxu0 %v1235_v25  ;;  %v982_v25 = vld [vmem:[%s1545_s5 + $0x1] ss:$0 sm:$0xff] }
  0x51   :  { %1110 = vmatprep.subr.bf16.mxu0 %v1386_v0 }
  0x53   :  { %1093 = vmatpush3.bf16.msra.mxu1 %v1229_v12 }
  0x54   :  { %1118 = vmatprep.subr.bf16.mxu1 %v1386_v0  ;;  %1111 = vmatpush3.bf16.msra.mxu0 %v1236_v26 }
  0x55   :  { %1112 = vmatprep.subr.bf16.mxu0 %v1386_v0 }
  0x58   :  { %1113 = vmatpush3.bf16.msra.mxu0 %v1237_v27 }
  0x59   :  { %1124 = vmatprep.subr.bf16.mxu0 %v1386_v0 }
  0xfa   :  { %v128_v18 = vpop.f32.mrf.mxu0 }
  0xfb   :  { %v135_v21 = vadd.f32 %v128_v18, %v82_v1 }
  0xfc   :  { %v1076_v19 = vpop.f32.mrf.mxu0 }
  0xfd   :  { %v1254_v19 = vld [vmem:[#allocation7 + $0xb8] sm:$0xff]  }
  0xfe   :  { %v131_v20 = vpop.f32.mrf.mxu0 }
  0xff   :  { %v136_v22 = vadd.f32 %v131_v20, %v83_v2  ;;  %v1255_v20 = vld [vmem:[#allocation7 + $0xb0] sm:$0xff]  }
 0x100   :  { %v1077_v23 = vpop.f32.mrf.mxu0 }
 0x101   :  { %v137_v24 = vpack.c.bf16 %v136_v22, %v135_v21  ;;  %v1256_v21 = vld [vmem:[#allocation7 + $0xa8] sm:$0xff]   ;;  %v1257_v22 = vld [vmem:[#allocation7 + $0xa0] sm:$0xff]   ;;  %v1258_v23 = vld [vmem:[#allocation7 + $0x98] sm:$0xff]  }
 0x103   :  { %1095 = vmatmul.mubr.bf16.vlgmr.msra.gmra.mxu1 %v137_v24  ;;  %v1259_v24 = vld [vmem:[#allocation7 + $0x90] sm:$0xff]  }
 0x104   :  { %1120 = vmatprep.mubr.msk.bf16.mxu1 %vm1387_vm0, %v1386_v0 }
 0x1c3   :  { %v243_v29 = vpop.f32.mrf.mxu1 }
 0x1c4   :  { %v244_v31 = vadd.f32 %v952_v28, %v243_v29 }
 0x1c5   :  { %v1096_v30 = vpop.f32.mrf.mxu1 }
 0x1c6   :  { %v250_v35 = vmax.f32 %v244_v31, 0.0 }
 0x1c7   :  { %v246_v32 = vpop.f32.mrf.mxu1 }
 0x1c8   :  { %v247_v33 = vadd.f32 %v952_v28, %v246_v32 }
 0x1c9   :  { %v1097_v34 = vpop.f32.mrf.mxu1 }
 0x1ca   :  { %v251_v36 = vmax.f32 %v247_v33, 0.0 }
 0x1cc   :  { %v252_v37 = vpack.c.bf16 %v251_v36, %v250_v35  ;;  %v1260_v35 = vld [vmem:[#allocation7 + $0x88] sm:$0xff]   ;;  %v1261_v36 = vld [vmem:[#allocation7 + $0x80] sm:$0xff]  }
 0x1ce   :  { %1115 = vmatmul.mubr.bf16.vlgmr.msra.gmra.mxu0 %v252_v37  ;;  %v1262_v37 = vld [vmem:[#allocation8 + $0xb8] sm:$0xff]  }
 0x1cf   :  { %1140 = vmatprep.mubr.msk.bf16.mxu0 %vm1387_vm0, %v1386_v0  ;;  %1125 = vmatpush3.bf16.msra.mxu0 %v1238_v38  ;;  %v1263_v38 = vld [vmem:[#allocation8 + $0xb0] sm:$0xff]  }
 0x1d0   :  { %1126 = vmatprep.subr.bf16.mxu0 %v1386_v0 }
 0x1d3   :  { %1127 = vmatpush3.bf16.msra.mxu0 %v1239_v39  ;;  %v1264_v39 = vld [vmem:[#allocation8 + $0xa8] sm:$0xff]  }
 0x1d4   :  { %1128 = vmatprep.subr.bf16.mxu0 %v1386_v0 }
 0x1d7   :  { %1129 = vmatpush3.bf16.msra.mxu0 %v1240_v40  ;;  %v1266_v40 = vld [vmem:[#allocation8 + $0x98] sm:$0xff]  }
 0x1d8   :  { %1130 = vmatprep.subr.bf16.mxu0 %v1386_v0 }
 0x1db   :  { %1131 = vmatpush3.bf16.msra.mxu0 %v1241_v41 }
 0x1dc   :  { %1132 = vmatprep.subr.bf16.mxu0 %v1386_v0 }
 0x1df   :  { %1133 = vmatpush3.bf16.msra.mxu0 %v1242_v42 }
 0x1e0   :  { %1134 = vmatprep.subr.bf16.mxu0 %v1386_v0 }
 0x1e3   :  { %1135 = vmatpush3.bf16.msra.mxu0 %v1243_v43 }
 0x1e4   :  { %1136 = vmatprep.subr.bf16.mxu0 %v1386_v0 }
 0x1e7   :  { %1137 = vmatpush3.bf16.msra.mxu0 %v1244_v54 }
 0x1e8   :  { %1138 = vmatprep.subr.bf16.mxu0 %v1386_v0 }
 0x1eb   :  { %1139 = vmatpush3.bf16.msra.mxu0 %v1245_v55 }
 0x1ec   :  { %1164 = vmatprep.subr.bf16.mxu0 %v1386_v0 }
 0x28e   :  { %v358_v45 = vpop.f32.mrf.mxu0 }
 0x28f   :  { %v359_v46 = vadd.f32 %v961_v44, %v358_v45 }
 0x290   :  { %v1116_v47 = vpop.f32.mrf.mxu0 }
 0x291   :  { %v365_v48 = vmax.f32 %v359_v46, 0.0 }
 0x292   :  { %v361_v49 = vpop.f32.mrf.mxu0 }
 0x293   :  { %367 = vst [vmem:[#allocation10] sm:$0xff] %v365_v48  ;;  %v362_v50 = vadd.f32 %v961_v44, %v361_v49  ;;  %v1268_v49 = vld [vmem:[#allocation8 + $0x88] sm:$0xff]  }
 0x294   :  { %v1117_v51 = vpop.f32.mrf.mxu0 }
 0x295   :  { %v366_v52 = vmax.f32 %v362_v50, 0.0  ;;  %v1269_v50 = vld [vmem:[#allocation8 + $0x80] sm:$0xff]   ;;  %v993_v51 = vld [vmem:[%s1543_s3 + $0x2] ss:$0 sm:$0xff]  ;;  %s1388_s3 = smov [#allocation10]  }
 0x296   :  { %s936_s7 = sshll.u32 %s1388_s3, 4  ;;  %s937_s7 = int_to_ptr.vmem [resolvable:$true] %s936_s7 }
 0x297   :  { %368 = vst [vmem:[#allocation10 + $0x8] sm:$0xff] %v366_v52  ;;  %v369_v53 = vpack.c.bf16 %v366_v52, %v365_v48  ;;  %s1350_s8 = scalar_lea.vmem %s937_s7, 768  ;;  %p1355_p7 = scmp.lt.s32.totalorder %s937_s7, %s937_s7 }
 0x298   :  { %p1351_p6 = scmp.ne.s32.totalorder %s937_s7, %s1350_s8  ;;  %p1356_p8 = scmp.lt.s32.totalorder %s1350_s8, %s1350_s8 }
 0x299   :  { %1119 = vmatpush3.bf16.msra.mxu1 %v369_v53 }
 0x29a   :  { %1144 = vmatprep.subr.bf16.mxu1 %v1386_v0  ;;  %p1357_p9 = por %p1356_p8, %p1355_p7 }
 0x29c   :  { %1121 = vmatmul.mubr.msk.bf16.vlgmr.msra.gmra.mxu1 %vm90_vm1, %v1445_v4  ;;  %p1358_p10 = pnand %p1357_p9, %p1351_p6 }
 0x29d   :  { %1160 = vmatprep.mubr.msk.bf16.mxu1 %vm1387_vm0, %v1386_v0  ;;  %1145 = vmatpush3.bf16.msra.mxu1 %v1246_v56 }
 0x29e   :  { %1146 = vmatprep.subr.bf16.mxu1 %v1386_v0 }
 0x2a1   :  { %1147 = vmatpush3.bf16.msra.mxu1 %v1247_v57 }
 0x2a2   :  { %1148 = vmatprep.subr.bf16.mxu1 %v1386_v0 }
 0x2a5   :  { %1149 = vmatpush3.bf16.msra.mxu1 %v1248_v58 }
 0x2a6   :  { %1150 = vmatprep.subr.bf16.mxu1 %v1386_v0 }
 0x2a9   :  { %1151 = vmatpush3.bf16.msra.mxu1 %v1249_v59 }
 0x2aa   :  { %1152 = vmatprep.subr.bf16.mxu1 %v1386_v0 }
 0x2ad   :  { %1153 = vmatpush3.bf16.msra.mxu1 %v1250_v60 }
 0x2ae   :  { %1154 = vmatprep.subr.bf16.mxu1 %v1386_v0 }
 0x2b1   :  { %1155 = vmatpush3.bf16.msra.mxu1 %v1251_v6 }
 0x2b2   :  { %1156 = vmatprep.subr.bf16.mxu1 %v1386_v0 }
 0x2b5   :  { %1157 = vmatpush3.bf16.msra.mxu1 %v1252_v7 }
 0x2b6   :  { %1158 = vmatprep.subr.bf16.mxu1 %v1386_v0 }
 0x2b9   :  { %1159 = vmatpush3.bf16.msra.mxu1 %v1253_v8 }
 0x2ba   :  { %1170 = vmatprep.subr.bf16.mxu1 %v1386_v0 }
 0x35c   :  { %v404_v61 = vpop.f32.mrf.mxu1 }
 0x35d   :  { %v411_v1 = vadd.f32 %v404_v61, %v365_v48  ;;  %v1267_v48 = vld [vmem:[#allocation8 + $0x90] sm:$0xff]  }
 0x35e   :  { %v1122_v62 = vpop.f32.mrf.mxu1 }
 0x360   :  { %v407_v63 = vpop.f32.mrf.mxu1 }
 0x361   :  { %v412_v2 = vadd.f32 %v407_v63, %v366_v52 }
 0x362   :  { %v1123_v3 = vpop.f32.mrf.mxu1 }
 0x363   :  { %v413_v5 = vpack.c.bf16 %v412_v2, %v411_v1 }
 0x365   :  { %1141 = vmatmul.mubr.bf16.vlgmr.msra.gmra.mxu0 %v413_v5 }
 0x366   :  { %1166 = vmatprep.mubr.msk.bf16.mxu0 %vm1387_vm0, %v1386_v0 }
 0x425   :  { %v521_v10 = vpop.f32.mrf.mxu0 }
 0x426   :  { %v522_v12 = vadd.f32 %v972_v9, %v521_v10 }
 0x427   :  { %v1142_v11 = vpop.f32.mrf.mxu0 }
 0x428   :  { %v528_v16 = vmax.f32 %v522_v12, 0.0 }
 0x429   :  { %v524_v13 = vpop.f32.mrf.mxu0 }
 0x42a   :  { %v525_v14 = vadd.f32 %v972_v9, %v524_v13 }
 0x42b   :  { %v1143_v15 = vpop.f32.mrf.mxu0 }
 0x42c   :  { %v529_v17 = vmax.f32 %v525_v14, 0.0 }
 0x42e   :  { %v530_v18 = vpack.c.bf16 %v529_v17, %v528_v16 }
 0x430   :  { %1161 = vmatmul.mubr.bf16.vlgmr.msra.gmra.mxu1 %v530_v18 }
 0x431   :  { %1186 = vmatprep.mubr.msk.bf16.mxu1 %vm1387_vm0, %v1386_v0  ;;  %1171 = vmatpush3.bf16.msra.mxu1 %v1254_v19 }
 0x432   :  { %1172 = vmatprep.subr.bf16.mxu1 %v1386_v0 }
 0x435   :  { %1173 = vmatpush3.bf16.msra.mxu1 %v1255_v20 }
 0x436   :  { %1174 = vmatprep.subr.bf16.mxu1 %v1386_v0 }
 0x439   :  { %1175 = vmatpush3.bf16.msra.mxu1 %v1256_v21 }
 0x43a   :  { %1176 = vmatprep.subr.bf16.mxu1 %v1386_v0 }
 0x43d   :  { %1177 = vmatpush3.bf16.msra.mxu1 %v1257_v22 }
 0x43e   :  { %1178 = vmatprep.subr.bf16.mxu1 %v1386_v0 }
 0x441   :  { %1179 = vmatpush3.bf16.msra.mxu1 %v1258_v23 }
 0x442   :  { %1180 = vmatprep.subr.bf16.mxu1 %v1386_v0 }
 0x445   :  { %1181 = vmatpush3.bf16.msra.mxu1 %v1259_v24 }
 0x446   :  { %1182 = vmatprep.subr.bf16.mxu1 %v1386_v0 }
 0x449   :  { %1183 = vmatpush3.bf16.msra.mxu1 %v1260_v35 }
 0x44a   :  { %1184 = vmatprep.subr.bf16.mxu1 %v1386_v0 }
 0x44d   :  { %1185 = vmatpush3.bf16.msra.mxu1 %v1261_v36 }
 0x4f0   :  { %v638_v26 = vpop.f32.mrf.mxu1 }
 0x4f1   :  { %v639_v27 = vadd.f32 %v982_v25, %v638_v26 }
 0x4f2   :  { %v1162_v28 = vpop.f32.mrf.mxu1 }
 0x4f3   :  { %v645_v29 = vmax.f32 %v639_v27, 0.0 }
 0x4f4   :  { %v641_v30 = vpop.f32.mrf.mxu1 }
 0x4f5   :  { %648 = vst [vmem:[#allocation10 + $0x10] sm:$0xff] %v645_v29  ;;  %v642_v31 = vadd.f32 %v982_v25, %v641_v30 }
 0x4f6   :  { %v1163_v32 = vpop.f32.mrf.mxu1 }
 0x4f7   :  { %v646_v33 = vmax.f32 %v642_v31, 0.0 }
 0x4f9   :  { %649 = vst [vmem:[#allocation10 + $0x18] sm:$0xff] %v646_v33  ;;  %v650_v34 = vpack.c.bf16 %v646_v33, %v645_v29 }
 0x4fb   :  { %1165 = vmatpush3.bf16.msra.mxu0 %v650_v34 }
 0x4fc   :  { %1190 = vmatprep.subr.bf16.mxu0 %v1386_v0 }
 0x4fe   :  { %1167 = vmatmul.mubr.msk.bf16.vlgmr.msra.gmra.mxu0 %vm90_vm1, %v1445_v4  ;;  %v1265_v4 = vld [vmem:[#allocation8 + $0xa0] sm:$0xff]  }
 0x4ff   :  { %1206 = vmatprep.mubr.msk.bf16.mxu0 %vm1387_vm0, %v1386_v0  ;;  %1191 = vmatpush3.bf16.msra.mxu0 %v1262_v37 }
 0x500   :  { %1192 = vmatprep.subr.bf16.mxu0 %v1386_v0 }
 0x503   :  { %1193 = vmatpush3.bf16.msra.mxu0 %v1263_v38 }
 0x504   :  { %1194 = vmatprep.subr.bf16.mxu0 %v1386_v0 }
 0x507   :  { %1195 = vmatpush3.bf16.msra.mxu0 %v1264_v39 }
 0x508   :  { %1196 = vmatprep.subr.bf16.mxu0 %v1386_v0 }
 0x50b   :  { %1197 = vmatpush3.bf16.msra.mxu0 %v1265_v4 }
 0x50c   :  { %1198 = vmatprep.subr.bf16.mxu0 %v1386_v0 }
 0x50f   :  { %1199 = vmatpush3.bf16.msra.mxu0 %v1266_v40 }
 0x510   :  { %1200 = vmatprep.subr.bf16.mxu0 %v1386_v0 }
 0x513   :  { %1201 = vmatpush3.bf16.msra.mxu0 %v1267_v48 }
 0x514   :  { %1202 = vmatprep.subr.bf16.mxu0 %v1386_v0 }
 0x517   :  { %1203 = vmatpush3.bf16.msra.mxu0 %v1268_v49 }
 0x518   :  { %1204 = vmatprep.subr.bf16.mxu0 %v1386_v0  ;;  %v1003_v0 = vld [vmem:[%s1545_s5 + $0x2] ss:$0 sm:$0xff] }
 0x51b   :  { %1205 = vmatpush3.bf16.msra.mxu0 %v1269_v50 }
 0x5be   :  { %v685_v41 = vpop.f32.mrf.mxu0 }
 0x5bf   :  { %v692_v44 = vadd.f32 %v685_v41, %v645_v29 }
 0x5c0   :  { %v1168_v42 = vpop.f32.mrf.mxu0 }
 0x5c2   :  { %v688_v43 = vpop.f32.mrf.mxu0 }
 0x5c3   :  { %v693_v45 = vadd.f32 %v688_v43, %v646_v33 }
 0x5c4   :  { %v1169_v46 = vpop.f32.mrf.mxu0 }
 0x5c5   :  { %v694_v47 = vpack.c.bf16 %v693_v45, %v692_v44 }
 0x5c7   :  { %1187 = vmatmul.mubr.bf16.vlgmr.msra.gmra.mxu1 %v694_v47 }
 0x687   :  { %v802_v52 = vpop.f32.mrf.mxu1 }
 0x688   :  { %v803_v54 = vadd.f32 %v993_v51, %v802_v52 }
 0x689   :  { %v1188_v53 = vpop.f32.mrf.mxu1 }
 0x68a   :  { %v809_v58 = vmax.f32 %v803_v54, 0.0 }
 0x68b   :  { %v805_v55 = vpop.f32.mrf.mxu1 }
 0x68c   :  { %v806_v56 = vadd.f32 %v993_v51, %v805_v55 }
 0x68d   :  { %v1189_v57 = vpop.f32.mrf.mxu1 }
 0x68e   :  { %v810_v59 = vmax.f32 %v806_v56, 0.0 }
 0x690   :  { %v811_v60 = vpack.c.bf16 %v810_v59, %v809_v58 }
 0x692   :  { %1207 = vmatmul.mubr.bf16.vlgmr.msra.gmra.mxu0 %v811_v60 }
 0x752   :  { %v919_v61 = vpop.f32.mrf.mxu0 }
 0x753   :  { %v920_v62 = vadd.f32 %v1003_v0, %v919_v61 }
 0x754   :  { %v1208_v63 = vpop.f32.mrf.mxu0 }
 0x755   :  { %v926_v1 = vmax.f32 %v920_v62, 0.0 }
 0x756   :  { %v922_v2 = vpop.f32.mrf.mxu0 }
 0x757   :  { %929 = vst [vmem:[#allocation10 + $0x20] sm:$0xff] %v926_v1  ;;  %v923_v3 = vadd.f32 %v1003_v0, %v922_v2 }
 0x758   :  { %v1209_v5 = vpop.f32.mrf.mxu0 }
 0x759   :  { %v927_v6 = vmax.f32 %v923_v3, 0.0 }
 0x75b   :  { %930 = vst [vmem:[#allocation10 + $0x28] sm:$0xff] %v927_v6 }
 0x75c   :  { %1361 = shalt.err (!%p1358_p10)
}
 0x75d   :  { %942 = dma.vmem_to_hbm [thread:$0]  %s937_s7, 768, %s1546_s6, [#allocation4], %s1379_s24, %s1379_s24, %s1380_s25  }
 0x75e   :  { %1376 = dma.done.wait [#allocation4], 768  }
 0x75f   :  { %1377 = vsyncadd [#allocation4], 4294966528 }
 0x760   :  { %946 = vsyncpa [#allocation3], 1 }
 0x761   :  { %947 = vsyncpa [#allocation6], 1 }
 0x762   :  { %948 = vsyncpa [#allocation9], 1 }
 0x763   :  { %949 = vsyncpa [#allocation4], 1 }

</bundles_post_ra>
